<compile_context>
chip_gen: v5e
topology: v5e:2x2
jax: 0.10.0
libtpu: 0.0.40
codegen_flags: <defaults>
</compile_context>

<pallas_src>
import functools

import jax
import jax.numpy as jnp
from jax.experimental import pallas as pl
from jax.experimental.pallas import tpu as pltpu


def _round_up(x: int, m: int) -> int:
    return (x + m - 1) // m * m


# --------------------------------------------------------------------------
# Kernels
# --------------------------------------------------------------------------
def _head_eval_kernel(x_ref, w_ref, b_ref, o_ref, *, compute_dtype):
    """relu -> (dropout is identity in eval) -> x @ W + b, fused in VMEM."""
    x = jnp.maximum(x_ref[...], 0.0)                       # ReLU in f32 (VPU)
    out = jnp.dot(x.astype(compute_dtype), w_ref[...],     # bf16 MXU, f32 acc
                  preferred_element_type=jnp.float32)
    o_ref[...] = (out + b_ref[...]).astype(o_ref.dtype)


def _head_train_kernel(seed_ref, x_ref, w_ref, b_ref, o_ref,
                       *, compute_dtype, p: float):
    """relu -> inverted dropout (keep prob 1-p) -> x @ W + b."""
    # Distinct mask per grid tile (and per seed).
    pltpu.prng_seed(seed_ref[0] + pl.program_id(0))
    x = jnp.maximum(x_ref[...], 0.0)

    if p >= 1.0:
        x = jnp.zeros_like(x)
    else:
        # Integer-threshold dropout: bits (as int32) are uniform over
        # [-2^31, 2^31); keep with probability (1 - p).
        bits = pltpu.bitcast(pltpu.prng_random_bits(x.shape), jnp.int32)
        thresh = int(round(p * (1 << 32))) - (1 << 31)
        thresh = max(-(1 << 31), min((1 << 31) - 1, thresh))
        keep = bits >= jnp.int32(thresh)
        scale = 1.0 / (1.0 - p)
        x = jnp.where(keep, x * scale, 0.0)

    out = jnp.dot(x.astype(compute_dtype), w_ref[...],
                  preferred_element_type=jnp.float32)
    o_ref[...] = (out + b_ref[...]).astype(o_ref.dtype)


# --------------------------------------------------------------------------
# One-time parameter preparation (hoisted out of the per-call hot path)
# --------------------------------------------------------------------------
def prepare_classifier_params(weight, bias, *, compute_dtype=jnp.bfloat16):
    """Transpose nn.Linear weight to (F, C), pad C to 128 lanes, cast weight.

    weight: (C, F) float32 (PyTorch layout), bias: (C,) float32.
    Returns (w_t_padded (F, C_pad) compute_dtype, bias_padded (1, C_pad) f32, C).
    """
    C, F = weight.shape
    C_pad = _round_up(C, 128)
    w_t = jnp.pad(weight.T.astype(compute_dtype), ((0, 0), (0, C_pad - C)))
    b_p = jnp.pad(bias.astype(jnp.float32), (0, C_pad - C)).reshape(1, C_pad)
    return w_t, b_p, C


# --------------------------------------------------------------------------
# Forward wrapper
# --------------------------------------------------------------------------
def fflstm_classifier(feat, w_t, b_pad, num_classes, *,
                      training=False, p=0.5, seed=0, block_rows=512):
    """feat: (B, F) f32; w_t: (F, C_pad) prepared weight; b_pad: (1, C_pad) f32.

    Returns (B, num_classes) f32.
    """
    B, F = feat.shape
    F2, C_pad = w_t.shape
    assert F == F2, "fc2_size mismatch"
    compute_dtype = w_t.dtype

    # Row tile: multiple of 8 (f32 sublanes); pad batch so the grid is exact.
    TB = _round_up(min(block_rows, _round_up(B, 8)), 8)
    B_pad = _round_up(B, TB)
    if B_pad != B:
        feat = jnp.pad(feat, ((0, B_pad - B), (0, 0)))
    grid = (B_pad // TB,)

    # VMEM budget: double-buffered feat/out tiles + resident weight & bias.
    # (v7x has only 64 MiB VMEM per TensorCore — cap the limit there.)
    vmem_bytes = (2 * TB * F * feat.dtype.itemsize
                  + 2 * TB * C_pad * 4
                  + 2 * F * C_pad * jnp.dtype(compute_dtype).itemsize
                  + 2 * C_pad * 4)
    vmem_limit = int(min(64 << 20, max(8 << 20, 2 * vmem_bytes)))

    cost = pl.CostEstimate(
        flops=2 * B_pad * F * C_pad,
        bytes_accessed=(B_pad * F * feat.dtype.itemsize
                        + F * C_pad * jnp.dtype(compute_dtype).itemsize
                        + B_pad * C_pad * 4 + C_pad * 4),
        transcendentals=0,
    )

    x_spec = pl.BlockSpec((TB, F), lambda i: (i, 0))
    w_spec = pl.BlockSpec((F, C_pad), lambda i: (0, 0))     # VMEM-resident
    b_spec = pl.BlockSpec((1, C_pad), lambda i: (0, 0))     # VMEM-resident
    o_spec = pl.BlockSpec((TB, C_pad), lambda i: (i, 0))    # lane-dense store

    common = dict(
        out_shape=jax.ShapeDtypeStruct((B_pad, C_pad), jnp.float32),
        compiler_params=pltpu.CompilerParams(
            dimension_semantics=("parallel",),
            vmem_limit_bytes=vmem_limit),
        cost_estimate=cost,
    )

    if training and p > 0.0:
        kernel = functools.partial(_head_train_kernel,
                                   compute_dtype=compute_dtype, p=float(p))
        seed_arr = jnp.asarray([seed], dtype=jnp.int32)
        out = pl.pallas_call(
            kernel,
            grid_spec=pltpu.PrefetchScalarGridSpec(
                num_scalar_prefetch=0,
                grid=grid,
                in_specs=[pl.BlockSpec(memory_space=pltpu.SMEM),  # seed scalar
                          x_spec, w_spec, b_spec],
                out_specs=o_spec),
            **common,
        )(seed_arr, feat, w_t, b_pad)
    else:
        # Eval (or p == 0): specialized variant with no seed operand at all.
        kernel = functools.partial(_head_eval_kernel, compute_dtype=compute_dtype)
        out = pl.pallas_call(
            kernel,
            grid_spec=pltpu.PrefetchScalarGridSpec(
                num_scalar_prefetch=0,
                grid=grid,
                in_specs=[x_spec, w_spec, b_spec],
                out_specs=o_spec),
            **common,
        )(feat, w_t, b_pad)

    return out[:B, :num_classes]


if __name__ == "__main__":
    # Small shapes consistent with the module: feat is (batch, fc2_size).
    B, FC2, NUM_CLASSES = 8, 128, 16

    key = jax.random.PRNGKey(0)
    k_feat, k_w, k_b = jax.random.split(key, 3)

    feat = jax.random.normal(k_feat, (B, FC2), dtype=jnp.float32)

    # Deterministic parameter init mimicking nn.Linear: U(-1/sqrt(F), 1/sqrt(F)).
    bound = 1.0 / (FC2 ** 0.5)
    weight = jax.random.uniform(k_w, (NUM_CLASSES, FC2),
                                minval=-bound, maxval=bound, dtype=jnp.float32)
    bias = jax.random.uniform(k_b, (NUM_CLASSES,),
                              minval=-bound, maxval=bound, dtype=jnp.float32)

    # One-time parameter prep (transpose + lane padding + bf16 cast).
    w_t, b_pad, C = prepare_classifier_params(weight, bias,
                                              compute_dtype=jnp.bfloat16)

    # Eval mode: dropout is identity, matching PyTorch .eval().
    out = fflstm_classifier(feat, w_t, b_pad, C, training=False)
    out = jax.block_until_ready(out)

    # Reference with operands quantized to bf16 exactly as the kernel's MXU
    # path sees them (accumulation stays f32), so the tolerance can stay tight.
    x_q = jnp.maximum(feat, 0.0).astype(jnp.bfloat16).astype(jnp.float32)
    w_q = weight.T.astype(jnp.bfloat16).astype(jnp.float32)
    ref = x_q @ w_q + bias

    assert out.shape == (B, NUM_CLASSES)
    assert jnp.allclose(out, ref, atol=5e-3, rtol=5e-3), \
        float(jnp.max(jnp.abs(out - ref)))

    print("KERNEL_OK")
</pallas_src>

<mosaic_0001>
module attributes {stable_mosaic.version = 11 : i64} {
  func.func @_head_eval_kernel(%arg0: i32, %arg1: memref<8x128xf32, #tpu.memory_space<vmem>>, %arg2: memref<128x128xbf16, #tpu.memory_space<vmem>>, %arg3: memref<1x128xf32, #tpu.memory_space<vmem>>, %arg4: memref<8x128xf32, #tpu.memory_space<vmem>>) attributes {dimension_semantics = [#tpu.dimension_semantics<parallel>], iteration_bounds = array<i64: 1>, scalar_prefetch = 0 : i64, scratch_operands = 0 : i64, tpu.core_type = #tpu.core_type<tc>, window_params = [{transform_indices = @transform_0, window_bounds = array<i64: 8, 128>}, {pipeline_mode = #tpu.pipeline_mode<synchronous>, transform_indices = @transform_1, window_bounds = array<i64: 128, 128>}, {pipeline_mode = #tpu.pipeline_mode<synchronous>, transform_indices = @transform_2, window_bounds = array<i64: 1, 128>}, {transform_indices = @transform_3, window_bounds = array<i64: 8, 128>}]} {
    %c0 = arith.constant 0 : index
    %c0_0 = arith.constant 0 : index
    %0 = vector.load %arg1[%c0, %c0_0] : memref<8x128xf32, #tpu.memory_space<vmem>>, vector<8x128xf32>
    %cst = arith.constant 0.000000e+00 : f32
    %1 = vector.broadcast %cst : f32 to vector<8x128xf32>
    %2 = arith.maximumf %0, %1 : vector<8x128xf32>
    %3 = arith.truncf %2 : vector<8x128xf32> to vector<8x128xbf16>
    %c0_1 = arith.constant 0 : index
    %c0_2 = arith.constant 0 : index
    %4 = vector.load %arg2[%c0_1, %c0_2] : memref<128x128xbf16, #tpu.memory_space<vmem>>, vector<128x128xbf16>
    %cst_3 = arith.constant dense<0.000000e+00> : vector<8x128xf32>
    %5 = tpu.matmul %3, %4, %cst_3 {dimension_numbers = #tpu.dot_dimension_numbers<[1], [0], [0], [1], [0, 0, 1, 1], [], []>} : vector<8x128xbf16>, vector<128x128xbf16>, vector<8x128xf32> -> vector<8x128xf32>
    %c0_4 = arith.constant 0 : index
    %c0_5 = arith.constant 0 : index
    %6 = vector.load %arg3[%c0_4, %c0_5] : memref<1x128xf32, #tpu.memory_space<vmem>>, vector<1x128xf32>
    %7 = vector.broadcast %6 : vector<1x128xf32> to vector<8x128xf32>
    %8 = arith.addf %5, %7 : vector<8x128xf32>
    %c0_6 = arith.constant 0 : index
    %c0_7 = arith.constant 0 : index
    %9 = vector.load %arg4[%c0_6, %c0_7] : memref<8x128xf32, #tpu.memory_space<vmem>>, vector<8x128xf32>
    tpu.vector_store %arg4[%c0_6, %c0_7], %8 {strides = array<i32>} : memref<8x128xf32, #tpu.memory_space<vmem>>, vector<8x128xf32>,
    return
  }
  func.func @transform_0(%arg0: i32) -> (i32, i32) {
    %c0_i32 = arith.constant 0 : i32
    %c0_i32_0 = arith.constant 0 : i32
    return %arg0, %c0_i32 : i32, i32
  }
  func.func @transform_1(%arg0: i32) -> (i32, i32) {
    %c0_i32 = arith.constant 0 : i32
    %c0_i32_0 = arith.constant 0 : i32
    %c0_i32_1 = arith.constant 0 : i32
    return %c0_i32, %c0_i32_0 : i32, i32
  }
  func.func @transform_2(%arg0: i32) -> (i32, i32) {
    %c0_i32 = arith.constant 0 : i32
    %c0_i32_0 = arith.constant 0 : i32
    %c0_i32_1 = arith.constant 0 : i32
    return %c0_i32, %c0_i32_0 : i32, i32
  }
  func.func @transform_3(%arg0: i32) -> (i32, i32) {
    %c0_i32 = arith.constant 0 : i32
    %c0_i32_0 = arith.constant 0 : i32
    return %arg0, %c0_i32 : i32, i32
  }
}

</mosaic_0001>

<bundles_post_ra>
// kernel: tpu_custom_call.1
= control target key start
LH: loop header
LB: loop body
LE: loop exit
PB: predicated region body
PF: predicated region fallthrough
CT: control target
= control target key end

     0   :  { %8 = vsyncpa [#allocation3], 0  ;;  %s309_s0 = inlined_call_operand.hbm [shape: f32[8,128], index: 0, kind: input, shape index: {}]   ;;  %s310_s1 = inlined_call_operand.hbm [shape: bf16[128,128], index: 1, kind: input, shape index: {}]   ;;  %s311_s2 = inlined_call_operand.vmem [shape: f32[1,128], index: 2, kind: input, shape index: {}]   ;;  %s312_s3 = inlined_call_operand.hbm [shape: f32[8,128], index: 3, kind: output, shape index: {}]  }
   0x1   :  { %9 = vsyncpa [#allocation6], 0 }
   0x2   :  { %10 = vsyncpa [#allocation4], 0  ;;  %s16_s14 = sshll.u32 %s309_s0, 4  ;;  %s272_s15 = smov [#allocation2]   ;;  %s17_s14 = int_to_ptr.hbm [resolvable:$true] %s16_s14 }
   0x3   :  { %s18_s16 = sshll.u32 %s272_s15, 4  ;;  %s26_s19 = sshll.u32 %s310_s1, 4  ;;  %s19_s16 = int_to_ptr.vmem [resolvable:$true] %s18_s16  ;;  %s27_s19 = int_to_ptr.hbm [resolvable:$true] %s26_s19 }
   0x4   :  { %21 = dma.hbm_to_vmem [thread:$0]  %s17_s14, 128, %s19_s16, [#allocation3]  }
   0x5   :  { %s273_s20 = smov [#allocation5]   ;;  %s274_s22 = smov 64  }
   0x6   :  { %s28_s21 = sshll.u32 %s273_s20, 4  ;;  %s275_s23 = smov 4   ;;  %s29_s21 = int_to_ptr.vmem [resolvable:$true] %s28_s21 }
   0x7   :  { %34 = dma.hbm_to_vmem [thread:$0]  %s27_s19, 1024, %s29_s21, [#allocation6], %s274_s22, %s274_s22, %s275_s23  }
   0x8   :  { %266 = dma.done.wait [#allocation3], 128  }
   0x9   :  { %267 = vsyncadd [#allocation3], 4294967168 }
   0xa   :  { %268 = dma.done.wait [#allocation6], 1024  }
   0xb   :  { %269 = vsyncadd [#allocation6], 4294966272  ;;  %v187_v0 = vld [vmem:[#allocation5 + $0x38] sm:$0xff]  ;;  %v186_v1 = vld [vmem:[#allocation5 + $0x30] sm:$0xff]  ;;  %s276_s24 = smov [#allocation7]   ;;  %s137_s28 = sshll.u32 %s312_s3, 4  ;;  %s138_s28 = int_to_ptr.hbm [resolvable:$true] %s137_s28 }
   0xc   :  { %116 = vmatpush.bf16.msra.mxu0 %v187_v0  ;;  %v185_v2 = vld [vmem:[#allocation5 + $0x28] sm:$0xff]  ;;  %v184_v3 = vld [vmem:[#allocation5 + $0x20] sm:$0xff]  ;;  %v183_v4 = vld [vmem:[#allocation5 + $0x18] sm:$0xff]  ;;  %s135_s25 = sshll.u32 %s276_s24, 4  ;;  %s136_s25 = int_to_ptr.vmem [resolvable:$true] %s135_s25 }
   0xd   :  { %v182_v5 = vld [vmem:[#allocation5 + $0x10] sm:$0xff]  ;;  %v181_v6 = vld [vmem:[#allocation5 + $0x8] sm:$0xff]  ;;  %v45_v7 = vld [vmem:[#allocation2] sm:$0xff] }
   0xe   :  { %v46_v8 = vmax.f32 %v45_v7, 0.0  ;;  %v180_v9 = vld [vmem:[#allocation5] sm:$0xff]  ;;  %v193_v11 = vld [vmem:[%s311_s2] ss:$0 sm:$0xff] }
  0x10   :  { %117 = vmatpush.bf16.msra.mxu0 %v186_v1  ;;  %v47_v10 = vpack.c.bf16 %v46_v8, %v46_v8 }
  0x14   :  { %118 = vmatpush.bf16.msra.mxu0 %v185_v2 }
  0x18   :  { %119 = vmatpush.bf16.msra.mxu0 %v184_v3 }
  0x1c   :  { %120 = vmatpush.bf16.msra.mxu0 %v183_v4 }
  0x20   :  { %121 = vmatpush.bf16.msra.mxu0 %v182_v5 }
  0x24   :  { %122 = vmatpush.bf16.msra.mxu0 %v181_v6 }
  0x28   :  { %123 = vmatpush.bf16.msra.mxu0 %v180_v9 }
  0x2b   :  { %124 = vmatmul.bf16.vlgmr.msra.gmra.mxu0 %v47_v10 }
  0xa8   :  { %v125_v12 = vpop.f32.mrf.mxu0 }
  0xa9   :  { %v126_v13 = vadd.f32 %v193_v11, %v125_v12 }
  0xab   :  { %129 = vst [vmem:[#allocation7] sm:$0xff] %v126_v13 }
  0xac   :  { %140 = dma.vmem_to_hbm [thread:$0]  %s136_s25, 128, %s138_s28, [#allocation4]  }
  0xb0   :  { %v127_v14 = vpop.f32.mrf.mxu0 }
  0xb1   :  { %270 = dma.done.wait [#allocation4], 128  }
  0xb2   :  { %271 = vsyncadd [#allocation4], 4294967168 }
  0xb3   :  { %145 = vsyncpa [#allocation3], 1 }
  0xb4   :  { %146 = vsyncpa [#allocation6], 1 }
  0xb5   :  { %147 = vsyncpa [#allocation4], 1 }

</bundles_post_ra>
